<compile_context>
chip_gen: v5e
topology: v5e:2x2
jax: 0.10.0
libtpu: 0.0.40
codegen_flags: <defaults>
</compile_context>

<pallas_src>
import functools

import jax
import jax.numpy as jnp
from jax.experimental import pallas as pl
from jax.experimental.pallas import tpu as pltpu


def _round_up(v, m):
    return (v + m - 1) // m * m


def _vmem_capacity_bytes():
    """Physical VMEM of the attached TPU; conservative (v7x) default if unknown."""
    try:
        return int(pltpu.get_tpu_info().vmem_capacity_bytes)
    except Exception:
        return 64 << 20


def _gate_finalize(acc, p_ref, out_ref):
    """Gate math for h0 == 0: h1 = sigmoid(alpha) * (1 - z) * n.

    acc is the fused (tile_b, 3*Hg) f32 pre-activation [r|z|n]; slices are
    lane-tile aligned (Hg is a multiple of 128).
    """
    hg = out_ref.shape[-1]
    b_r = p_ref[0:1, :]     # b_ih_r + b_hh_r (pre-added at init)
    b_z = p_ref[1:2, :]     # b_ih_z + b_hh_z
    b_ni = p_ref[2:3, :]    # b_ih_n
    b_nh = p_ref[3:4, :]    # b_hh_n (gated by r, must stay separate)
    a = p_ref[4:5, :]       # sigmoid(alpha_logits), precomputed once
    r = jax.nn.sigmoid(acc[:, 0:hg] + b_r)
    z = jax.nn.sigmoid(acc[:, hg:2 * hg] + b_z)
    n = jnp.tanh(acc[:, 2 * hg:3 * hg] + b_ni + r * b_nh)
    out_ref[...] = (a * (1.0 - z) * n).astype(out_ref.dtype)


def _resident_kernel(x_ref, w_ref, p_ref, out_ref):
    """Weights fully resident: one fused MXU dot, gate math inline, no scratch."""
    acc = jnp.dot(x_ref[...], w_ref[...], preferred_element_type=jnp.float32)
    _gate_finalize(acc, p_ref, out_ref)


def _ktiled_kernel(x_ref, w_ref, p_ref, out_ref, acc_ref):
    """Fallback when the fused weights do not fit VMEM: accumulate over K."""
    k = pl.program_id(1)
    g = jnp.dot(x_ref[...], w_ref[...], preferred_element_type=jnp.float32)

    @pl.when(k == 0)
    def _():
        acc_ref[...] = g            # assign on the first step (no zero-init pass)

    @pl.when(k > 0)
    def _():
        acc_ref[...] += g

    @pl.when(k == pl.num_programs(1) - 1)
    def _():
        _gate_finalize(acc_ref[...], p_ref, out_ref)


@functools.partial(jax.jit, static_argnames=("cfg",))
def _pagru_forward(x, w_packed, params, *, cfg):
    """Pad/cast x, run the kernel, slice+cast the result — all fused under jit."""
    (D, H, Dp, Hp, nh, resident, vmem_budget) = cfg
    B = x.shape[0]
    Bp = _round_up(max(B, 1), 16)
    tile_b = Bp if Bp <= (256 if resident else 128) else (256 if resident else 128)
    Bp = _round_up(Bp, tile_b)
    nb = Bp // tile_b

    x_p = jnp.zeros((Bp, Dp), jnp.bfloat16).at[:B, :D].set(x.astype(jnp.bfloat16))

    if resident:
        Hg = Hp // nh
        vmem_need = (2 * tile_b * Dp * 2        # x tile, double-buffered (bf16)
                     + 2 * Dp * 3 * Hg * 2      # weight group, double-buffered
                     + 2 * 8 * Hg * 4           # params, double-buffered (f32)
                     + 2 * tile_b * Hg * 2)     # out tile, double-buffered (bf16)
        vmem_limit = int(min(max(vmem_need + (8 << 20), 32 << 20), vmem_budget))
        cost = pl.CostEstimate(
            flops=2 * Bp * Dp * 3 * Hp,
            transcendentals=3 * Bp * Hp,
            bytes_accessed=(nh * Bp * Dp * 2 + Dp * 3 * Hp * 2
                            + nh * 8 * Hp * 4 + Bp * Hp * 2))
        grid_spec = pltpu.PrefetchScalarGridSpec(
            num_scalar_prefetch=0,
            # hidden-group axis OUTER so the weight block index only changes nh-1
            # times -> each weight group is DMA'd once, not once per batch tile.
            grid=(nh, nb),
            in_specs=[
                pl.BlockSpec((tile_b, Dp), lambda j, b: (b, 0)),
                pl.BlockSpec((Dp, 3 * Hg), lambda j, b: (0, j)),
                pl.BlockSpec((8, Hg), lambda j, b: (0, j)),
            ],
            out_specs=pl.BlockSpec((tile_b, Hg), lambda j, b: (b, j)),
        )
        out_p = pl.pallas_call(
            _resident_kernel,
            out_shape=jax.ShapeDtypeStruct((Bp, Hp), jnp.bfloat16),
            grid_spec=grid_spec,
            compiler_params=pltpu.CompilerParams(
                dimension_semantics=("parallel", "parallel"),
                vmem_limit_bytes=vmem_limit),
            cost_estimate=cost,
        )(x_p, w_packed, params)
    else:
        tile_k = 512 if Dp % 512 == 0 else (256 if Dp % 256 == 0 else 128)
        nk = Dp // tile_k
        vmem_need = (2 * tile_b * tile_k * 2
                     + 2 * tile_k * 3 * Hp * 2
                     + 2 * 8 * Hp * 4
                     + 2 * tile_b * Hp * 2
                     + tile_b * 3 * Hp * 4)       # f32 accumulator scratch
        vmem_limit = int(min(max(vmem_need + (8 << 20), 32 << 20), vmem_budget))
        cost = pl.CostEstimate(
            flops=2 * Bp * Dp * 3 * Hp,
            transcendentals=3 * Bp * Hp,
            # weights genuinely re-streamed once per batch tile on this path
            bytes_accessed=(Bp * Dp * 2 + nb * Dp * 3 * Hp * 2
                            + 8 * Hp * 4 + Bp * Hp * 2))
        grid_spec = pltpu.PrefetchScalarGridSpec(
            num_scalar_prefetch=0,
            grid=(nb, nk),
            in_specs=[
                pl.BlockSpec((tile_b, tile_k), lambda b, k: (b, k)),
                pl.BlockSpec((tile_k, 3 * Hp), lambda b, k: (k, 0)),
                pl.BlockSpec((8, Hp), lambda b, k: (0, 0)),
            ],
            out_specs=pl.BlockSpec((tile_b, Hp), lambda b, k: (b, 0)),
            scratch_shapes=[pltpu.VMEM((tile_b, 3 * Hp), jnp.float32)],
        )
        out_p = pl.pallas_call(
            _ktiled_kernel,
            out_shape=jax.ShapeDtypeStruct((Bp, Hp), jnp.bfloat16),
            grid_spec=grid_spec,
            compiler_params=pltpu.CompilerParams(
                dimension_semantics=("parallel", "arbitrary"),
                vmem_limit_bytes=vmem_limit),
            cost_estimate=cost,
        )(x_p, w_packed, params)

    return out_p[:B, :H].astype(jnp.float32)


class PaGRUCellWrapper:
    """JAX/Pallas equivalent of the PyTorch PaGRUCellWrapper (single step, h0=0)."""

    def __init__(self, input_dim, hidden_dim, alpha="per_unit", key=None):
        assert alpha == "per_unit", "only alpha_mode='per_unit' is implemented"
        self.input_dim = input_dim
        self.hidden_dim = hidden_dim
        self.alpha_mode = alpha
        if key is None:
            key = jax.random.PRNGKey(42)
        k1, k2, k3, k4, k5 = jax.random.split(key, 5)
        bound = 1.0 / (hidden_dim ** 0.5)
        D, H = input_dim, hidden_dim

        # PyTorch-style uniform init in (-1/sqrt(H), 1/sqrt(H)).
        # NOTE: layout is (D, 3H) with gate order [r|z|n] — the transpose of
        # torch.nn.GRUCell's (3H, D); transpose real torch weights if loading.
        self.w_ih = jax.random.uniform(k1, (D, 3 * H), jnp.float32, -bound, bound)
        self.w_hh = jax.random.uniform(k2, (H, 3 * H), jnp.float32, -bound, bound)
        self.b_ih = jax.random.uniform(k3, (1, 3 * H), jnp.float32, -bound, bound)
        self.b_hh = jax.random.uniform(k4, (1, 3 * H), jnp.float32, -bound, bound)
        self.alpha_logits = jax.random.uniform(k5, (1, H), jnp.float32,
                                               -bound, bound)

        # ---------------- kernel config (generation-aware) -------------------
        Hp = _round_up(max(H, 1), 128)
        vmem_budget = int(_vmem_capacity_bytes() * 3 // 4)   # ~96MiB v5e/v6e, ~48MiB v7x

        # Hidden-group split: 2 independent 'parallel' column groups when Hp
        # allows it (gives v7x's 2nd TensorCore work even at a single batch tile).
        nh = 2 if (Hp % 256 == 0) else 1
        Hg = Hp // nh
        Dp_res = _round_up(max(D, 1), 16)      # no blanket 128-padding of D
        resident_need = (2 * Dp_res * 3 * Hg * 2     # weight group, double-buffered
                         + 2 * 256 * Dp_res * 2      # x tile at max tile_b=256
                         + 2 * 8 * Hg * 4            # params, double-buffered
                         + 2 * 256 * Hg * 2          # out tile, double-buffered
                         + (8 << 20))                # Mosaic internal scratch margin
        resident = resident_need <= vmem_budget
        if resident:
            Dp = Dp_res
        else:
            nh, Hg = 1, Hp
            Dp = _round_up(max(D, 1), 128)           # K-tiled fallback path

        self._cfg = (D, H, Dp, Hp, nh, bool(resident), int(vmem_budget))

        # ---- one-time packing: per hidden group j, columns are [r_j|z_j|n_j],
        #      bf16 matmul operands, lane-dense (multiples of 128) columns. ----
        w_ih_b = self.w_ih.astype(jnp.bfloat16)
        w = jnp.zeros((Dp, 3 * Hp), jnp.bfloat16)
        for j in range(nh):
            lo = j * Hg
            hi = min((j + 1) * Hg, H)
            if hi <= lo:
                continue
            for g in range(3):
                col0 = j * 3 * Hg + g * Hg
                w = w.at[:D, col0:col0 + (hi - lo)].set(
                    w_ih_b[:, g * H + lo:g * H + hi])
        self._w_packed = w

        params = jnp.zeros((8, Hp), jnp.float32)
        params = params.at[0, :H].set(self.b_ih[0, :H] + self.b_hh[0, :H])
        params = params.at[1, :H].set(self.b_ih[0, H:2 * H] + self.b_hh[0, H:2 * H])
        params = params.at[2, :H].set(self.b_ih[0, 2 * H:3 * H])
        params = params.at[3, :H].set(self.b_hh[0, 2 * H:3 * H])
        params = params.at[4, :H].set(jax.nn.sigmoid(self.alpha_logits[0]))
        self._params = params

    def __call__(self, x):
        # Kernel hard-codes h_0 == 0 (exactly what PaGRUCellWrapper.forward does).
        assert x.ndim == 2 and x.shape[1] == self.input_dim, "x must be (B, input_dim)"
        return _pagru_forward(x, self._w_packed, self._params, cfg=self._cfg)


def _reference(x, w_ih, w_hh, b_ih, b_hh, alpha_logits):
    """Pure-JAX f32 reference of the full (general-h0) GRU/PaGRU math."""
    B = x.shape[0]
    H = w_hh.shape[0]
    h0 = jnp.zeros((B, H), jnp.float32)
    gi = x @ w_ih + b_ih
    gh = h0 @ w_hh + b_hh
    r = jax.nn.sigmoid(gi[:, :H] + gh[:, :H])
    z = jax.nn.sigmoid(gi[:, H:2 * H] + gh[:, H:2 * H])
    n = jnp.tanh(gi[:, 2 * H:] + r * gh[:, 2 * H:])
    h_gru = (1.0 - z) * n + z * h0
    a = jax.nn.sigmoid(alpha_logits)
    return a * h_gru + (1.0 - a) * h0


if __name__ == "__main__":
    batch = 2
    input_dim = 16
    hidden_dim = 32

    key = jax.random.PRNGKey(0)
    kx, kp = jax.random.split(key)
    x = jax.random.normal(kx, (batch, input_dim), dtype=jnp.float32)

    cell = PaGRUCellWrapper(input_dim, hidden_dim, alpha="per_unit", key=kp)
    h1 = jax.block_until_ready(cell(x))

    ref = _reference(x, cell.w_ih, cell.w_hh, cell.b_ih, cell.b_hh,
                     cell.alpha_logits)
    assert h1.shape == (batch, hidden_dim)
    # bf16 matmul operands / bf16 kernel output (f32 accumulation) vs f32 reference.
    assert jnp.allclose(h1, ref, atol=1e-2, rtol=1e-2), "mismatch vs reference"

    print("KERNEL_OK")
</pallas_src>

<mosaic_0001>
module attributes {stable_mosaic.version = 11 : i64} {
  func.func @_resident_kernel(%arg0: i32, %arg1: i32, %arg2: memref<16x16xbf16, #tpu.memory_space<vmem>>, %arg3: memref<16x384xbf16, #tpu.memory_space<vmem>>, %arg4: memref<8x128xf32, #tpu.memory_space<vmem>>, %arg5: memref<16x128xbf16, #tpu.memory_space<vmem>>) attributes {dimension_semantics = [#tpu.dimension_semantics<parallel>, #tpu.dimension_semantics<parallel>], iteration_bounds = array<i64: 1, 1>, scalar_prefetch = 0 : i64, scratch_operands = 0 : i64, tpu.core_type = #tpu.core_type<tc>, window_params = [{transform_indices = @transform_0, window_bounds = array<i64: 16, 16>}, {transform_indices = @transform_1, window_bounds = array<i64: 16, 384>}, {transform_indices = @transform_2, window_bounds = array<i64: 8, 128>}, {transform_indices = @transform_3, window_bounds = array<i64: 16, 128>}]} {
    %c0 = arith.constant 0 : index
    %c0_0 = arith.constant 0 : index
    %0 = vector.load %arg2[%c0, %c0_0] : memref<16x16xbf16, #tpu.memory_space<vmem>>, vector<16x16xbf16>
    %c0_1 = arith.constant 0 : index
    %c0_2 = arith.constant 0 : index
    %1 = vector.load %arg3[%c0_1, %c0_2] : memref<16x384xbf16, #tpu.memory_space<vmem>>, vector<16x384xbf16>
    %cst = arith.constant dense<0.000000e+00> : vector<16x384xf32>
    %2 = tpu.matmul %0, %1, %cst {dimension_numbers = #tpu.dot_dimension_numbers<[1], [0], [0], [1], [0, 0, 1, 1], [], []>} : vector<16x16xbf16>, vector<16x384xbf16>, vector<16x384xf32> -> vector<16x384xf32>
    %c0_3 = arith.constant 0 : index
    %c0_4 = arith.constant 0 : index
    %3 = vector.load %arg4[%c0_3, %c0_4] : memref<8x128xf32, #tpu.memory_space<vmem>>, vector<1x128xf32>
    %c1 = arith.constant 1 : index
    %c0_5 = arith.constant 0 : index
    %4 = vector.load %arg4[%c1, %c0_5] : memref<8x128xf32, #tpu.memory_space<vmem>>, vector<1x128xf32>
    %c2 = arith.constant 2 : index
    %c0_6 = arith.constant 0 : index
    %5 = vector.load %arg4[%c2, %c0_6] : memref<8x128xf32, #tpu.memory_space<vmem>>, vector<1x128xf32>
    %c3 = arith.constant 3 : index
    %c0_7 = arith.constant 0 : index
    %6 = vector.load %arg4[%c3, %c0_7] : memref<8x128xf32, #tpu.memory_space<vmem>>, vector<1x128xf32>
    %c4 = arith.constant 4 : index
    %c0_8 = arith.constant 0 : index
    %7 = vector.load %arg4[%c4, %c0_8] : memref<8x128xf32, #tpu.memory_space<vmem>>, vector<1x128xf32>
    %8 = vector.extract_strided_slice %2 {offsets = [0, 0], sizes = [16, 128], strides = [1, 1]} : vector<16x384xf32> to vector<16x128xf32>
    %9 = vector.broadcast %3 : vector<1x128xf32> to vector<16x128xf32>
    %10 = arith.addf %8, %9 : vector<16x128xf32>
    %11 = arith.negf %10 : vector<16x128xf32>
    %12 = math.exp %11 : vector<16x128xf32>
    %cst_9 = arith.constant 1.000000e+00 : f32
    %13 = vector.broadcast %cst_9 : f32 to vector<16x128xf32>
    %14 = arith.addf %13, %12 : vector<16x128xf32>
    %15 = arith.divf %13, %14 : vector<16x128xf32>
    %16 = vector.extract_strided_slice %2 {offsets = [0, 128], sizes = [16, 128], strides = [1, 1]} : vector<16x384xf32> to vector<16x128xf32>
    %17 = vector.broadcast %4 : vector<1x128xf32> to vector<16x128xf32>
    %18 = arith.addf %16, %17 : vector<16x128xf32>
    %19 = arith.negf %18 : vector<16x128xf32>
    %20 = math.exp %19 : vector<16x128xf32>
    %cst_10 = arith.constant 1.000000e+00 : f32
    %21 = vector.broadcast %cst_10 : f32 to vector<16x128xf32>
    %22 = arith.addf %21, %20 : vector<16x128xf32>
    %23 = arith.divf %21, %22 : vector<16x128xf32>
    %24 = vector.extract_strided_slice %2 {offsets = [0, 256], sizes = [16, 128], strides = [1, 1]} : vector<16x384xf32> to vector<16x128xf32>
    %25 = vector.broadcast %5 : vector<1x128xf32> to vector<16x128xf32>
    %26 = arith.addf %24, %25 : vector<16x128xf32>
    %27 = vector.broadcast %6 : vector<1x128xf32> to vector<16x128xf32>
    %28 = arith.mulf %15, %27 : vector<16x128xf32>
    %29 = arith.addf %26, %28 : vector<16x128xf32>
    %30 = math.tanh %29 : vector<16x128xf32>
    %cst_11 = arith.constant 1.000000e+00 : f32
    %31 = vector.broadcast %cst_11 : f32 to vector<16x128xf32>
    %32 = arith.subf %31, %23 : vector<16x128xf32>
    %33 = vector.broadcast %7 : vector<1x128xf32> to vector<16x128xf32>
    %34 = arith.mulf %33, %32 : vector<16x128xf32>
    %35 = arith.mulf %34, %30 : vector<16x128xf32>
    %36 = arith.truncf %35 : vector<16x128xf32> to vector<16x128xbf16>
    %c0_12 = arith.constant 0 : index
    %c0_13 = arith.constant 0 : index
    %37 = vector.load %arg5[%c0_12, %c0_13] : memref<16x128xbf16, #tpu.memory_space<vmem>>, vector<16x128xbf16>
    tpu.vector_store %arg5[%c0_12, %c0_13], %36 {strides = array<i32>} : memref<16x128xbf16, #tpu.memory_space<vmem>>, vector<16x128xbf16>,
    return
  }
  func.func @transform_0(%arg0: i32, %arg1: i32) -> (i32, i32) {
    %c0_i32 = arith.constant 0 : i32
    %c0_i32_0 = arith.constant 0 : i32
    return %arg1, %c0_i32 : i32, i32
  }
  func.func @transform_1(%arg0: i32, %arg1: i32) -> (i32, i32) {
    %c0_i32 = arith.constant 0 : i32
    %c0_i32_0 = arith.constant 0 : i32
    return %c0_i32, %arg0 : i32, i32
  }
  func.func @transform_2(%arg0: i32, %arg1: i32) -> (i32, i32) {
    %c0_i32 = arith.constant 0 : i32
    %c0_i32_0 = arith.constant 0 : i32
    return %c0_i32, %arg0 : i32, i32
  }
  func.func @transform_3(%arg0: i32, %arg1: i32) -> (i32, i32) {
    %c0_i32 = arith.constant 0 : i32
    return %arg1, %arg0 : i32, i32
  }
}

</mosaic_0001>

<bundles_post_ra>
// kernel: _pagru_forward.1
= control target key start
LH: loop header
LB: loop body
LE: loop exit
PB: predicated region body
PF: predicated region fallthrough
CT: control target
= control target key end

     0   :  { %8 = vsyncpa [#allocation3], 0  ;;  %s303_s15 = smov [#allocation2]   ;;  %s304_s17 = smov 192   ;;  %s372_s0 = inlined_call_operand.vmem [shape: bf16[16,16], index: 0, kind: input, shape index: {}]   ;;  %s373_s1 = inlined_call_operand.hbm [shape: bf16[16,384], index: 1, kind: input, shape index: {}]   ;;  %s374_s2 = inlined_call_operand.vmem [shape: f32[8,128], index: 2, kind: input, shape index: {}]   ;;  %s375_s3 = inlined_call_operand.vmem [shape: bf16[16,128], index: 3, kind: output, shape index: {}]  }
   0x1   :  { %s15_s14 = sshll.u32 %s373_s1, 4  ;;  %s17_s16 = sshll.u32 %s303_s15, 4  ;;  %s16_s14 = int_to_ptr.hbm [resolvable:$true] %s15_s14  ;;  %s18_s16 = int_to_ptr.vmem [resolvable:$true] %s17_s16 }
   0x2   :  { %s305_s18 = smov 12  }
   0x3   :  { %23 = dma.hbm_to_vmem [thread:$0]  %s16_s14, 384, %s18_s16, [#allocation3], %s304_s17, %s304_s17, %s305_s18  }
   0x4   :  { %301 = dma.done.wait [#allocation3], 384  }
   0x5   :  { %302 = vsyncadd [#allocation3], 4294966912  ;;  %v223_v0 = vld [vmem:[#allocation2] sm:$0xf]  ;;  %v242_v1 = vld [vmem:[#allocation2 + $0x8] sm:$0xf0] }
   0x6   :  { %v241_v2 = vld [vmem:[#allocation2 + $0x4] sm:$0xf]  ;;  %v224_v3 = vor.u32 %v242_v1, %v223_v0  ;;  %v225_v4 = vld [vmem:[#allocation2 + $0xc] sm:$0xf0]  ;;  %v240_v5 = vld [vmem:[%s372_s0] sm:$0xff]  ;;  %vm58_vm0 = vcmask 130048  }
   0x7   :  { %v231_v6 = vld [vmem:[#allocation2 + $0x8] sm:$0xf]  ;;  %v228_v7 = vor.u32 %v241_v2, %v225_v4  ;;  %v243_v8 = vld [vmem:[#allocation2 + $0x10] sm:$0xf0]  ;;  %v252_v10 = vld [vmem:[%s374_s2] ss:$0 sm:$0xff] }
   0x8   :  { %69 = vmatpush.bf16.msra.mxu0 %v224_v3  ;;  %v232_v9 = vor.u32 %v243_v8, %v231_v6  ;;  %v253_v11 = vld [vmem:[%s374_s2 + $0x1] ss:$0 sm:$0xff]  ;;  %v254_v44 = vld [vmem:[%s374_s2 + $0x2] ss:$0 sm:$0xff]  ;;  %v255_v47 = vld [vmem:[%s374_s2 + $0x3] ss:$0 sm:$0xff] }
   0x9   :  { %83 = vmatpush.bf16.msra.mxu1 %v228_v7 }
   0xa   :  { %97 = vmatpush.bf16.msra.mxu2 %v232_v9 }
   0xb   :  { %233 = vmatmul.msk.bf16.vlgmr.msra.gmra.mxu0 %vm58_vm0, %v240_v5 }
   0xc   :  { %234 = vmatmul.msk.bf16.vlgmr.msra.gmra.mxu1 %vm58_vm0, %v240_v5 }
   0xd   :  { %235 = vmatmul.msk.bf16.vlgmr.msra.gmra.mxu2 %vm58_vm0, %v240_v5 }
  0x88   :  { %v71_v12 = vpop.f32.mrf.mxu0 }
  0x89   :  { %v110_v13 = vadd.f32 %v252_v10, %v71_v12  ;;  %v85_v14 = vpop.f32.mrf.mxu1 }
  0x8a   :  { %v151_v15 = vadd.f32 %v253_v11, %v85_v14 }
  0x8b   :  { %v236_v16 = vmul.f32 -1.442695, %v110_v13 }
  0x8c   :  { %v238_v17 = vmul.f32 -1.442695, %v151_v15 }
  0x8d   :  { %257 = vpow2.f32 %v236_v16 }
  0x8e   :  { %259 = vpow2.f32 %v238_v17 }
  0x90   :  { %v73_v18 = vpop.f32.mrf.mxu0  ;;  %v99_v39 = vpop.f32.mrf.mxu2 }
  0x91   :  { %v111_v19 = vadd.f32 %v252_v10, %v73_v18  ;;  %v87_v20 = vpop.f32.mrf.mxu1  ;;  %v192_v54 = vadd.f32 %v254_v44, %v99_v39 }
  0x92   :  { %v152_v21 = vadd.f32 %v253_v11, %v87_v20  ;;  %v256_v20 = vld [vmem:[%s374_s2 + $0x4] ss:$0 sm:$0xff] }
  0x93   :  { %v258_v22 = vpop.eup %257  ;;  %v237_v23 = vmul.f32 -1.442695, %v111_v19 }
  0x94   :  { %v260_v24 = vpop.eup %259  ;;  %v118_v25 = vadd.f32 1.0, %v258_v22  ;;  %v239_v26 = vmul.f32 -1.442695, %v152_v21 }
  0x95   :  { %v338_v27 = vadd.f32 1.0, %v260_v24  ;;  %261 = vpow2.f32 %v237_v23 }
  0x96   :  { %263 = vrcp.f32 %v118_v25  ;;  %v131_v37 = vand.u32 2147483648, %v118_v25  ;;  %v129_v41 = vand.u32 2147483647, %v118_v25  ;;  %vm125_vm2 = vweird.f32 %v118_v25 }
  0x97   :  { %265 = vrcp.f32 %v338_v27  ;;  %vm166_vm5 = vweird.f32 %v338_v27  ;;  %v170_v60 = vand.u32 2147483647, %v338_v27  ;;  %v172_v62 = vand.u32 2147483648, %v338_v27 }
  0x98   :  { %267 = vpow2.f32 %v239_v26  ;;  %v132_v46 = vor.u32 1.1754944e-38, %v131_v37  ;;  %vm130_vm4 = vcmp.eq.f32.partialorder %v129_v41, 8.507059e+37  ;;  %v101_v3 = vpop.f32.mrf.mxu2 }
  0x99   :  { %v173_v11 = vor.u32 1.1754944e-38, %v172_v62  ;;  %v193_v13 = vadd.f32 %v254_v44, %v101_v3  ;;  %vm171_vm15 = vcmp.eq.f32.partialorder %v170_v60, 8.507059e+37 }
  0x9b   :  { %v262_v28 = vpop.eup %261 }
  0x9c   :  { %v264_v29 = vpop.eup %263  ;;  %v119_v30 = vadd.f32 1.0, %v262_v28 }
  0x9d   :  { %v341_v31 = vpop.eup %265  ;;  %v121_v32 = vmul.f32 %v264_v29, %v118_v25  ;;  %vm126_vm1 = vweird.f32 %v264_v29 }
  0x9e   :  { %v268_v33 = vpop.eup %267  ;;  %v162_v34 = vmul.f32 %v341_v31, %v338_v27  ;;  %269 = vrcp.f32 %v119_v30  ;;  %vm127_vm3 = vmor %vm125_vm2, %vm126_vm1  ;;  %v146_v55 = vand.u32 2147483648, %v119_v30  ;;  %v144_v58 = vand.u32 2147483647, %v119_v30 }
  0x9f   :  { %v160_v35 = vadd.f32 1.0, %v268_v33  ;;  %v122_v36 = vsub.f32 1.0, %v121_v32  ;;  %vm167_vm7 = vweird.f32 %v341_v31  ;;  %vm140_vm8 = vweird.f32 %v119_v30 }
  0xa0   :  { %v163_v38 = vsub.f32 1.0, %v162_v34  ;;  %v147_v4 = vor.u32 1.1754944e-38, %v146_v55  ;;  %vm359_vm11 = vmor %vm166_vm5, %vm167_vm7  ;;  %vm145_vm12 = vcmp.eq.f32.partialorder %v144_v58, 8.507059e+37 }
  0xa1   :  { %271 = vrcp.f32 %v160_v35  ;;  %v123_v40 = vmul.f32 %v264_v29, %v122_v36  ;;  %v187_v63 = vand.u32 2147483648, %v160_v35  ;;  %v185_v2 = vand.u32 2147483647, %v160_v35 }
  0xa2   :  { %v164_v48 = vmul.f32 %v341_v31, %v163_v38  ;;  %vm181_vm13 = vweird.f32 %v160_v35 }
  0xa3   :  { %v124_v43 = vadd.f32 %v264_v29, %v123_v40  ;;  %v188_v12 = vor.u32 1.1754944e-38, %v187_v63  ;;  %vm186_vm0 = vcmp.eq.f32.partialorder %v185_v2, 8.507059e+37 }
  0xa4   :  { %v270_v42 = vpop.eup %269  ;;  %v165_v59 = vadd.f32 %v341_v31, %v164_v48 }
  0xa5   :  { %v136_v45 = vmul.f32 %v270_v42, %v119_v30  ;;  %v128_v49 = vsel %vm127_vm3, %v264_v29, %v124_v43  ;;  %vm141_vm6 = vweird.f32 %v270_v42 }
  0xa6   :  { %v133_v51 = vsel %vm130_vm4, %v132_v46, %v128_v49  ;;  %vm142_vm10 = vmor %vm140_vm8, %vm141_vm6  ;;  %v169_v9 = vsel %vm359_vm11, %v341_v31, %v165_v59 }
  0xa7   :  { %v272_v50 = vpop.eup %271  ;;  %v137_v52 = vsub.f32 1.0, %v136_v45  ;;  %v195_v56 = vmul.f32 %v255_v47, %v133_v51  ;;  %v174_v16 = vsel %vm171_vm15, %v173_v11, %v169_v9 }
  0xa8   :  { %v177_v53 = vmul.f32 %v272_v50, %v160_v35  ;;  %vm182_vm9 = vweird.f32 %v272_v50  ;;  %v201_v19 = vsub.f32 1.0, %v174_v16 }
  0xa9   :  { %v138_v57 = vmul.f32 %v270_v42, %v137_v52  ;;  %v197_v6 = vadd.f32 %v195_v56, %v192_v54  ;;  %vm183_vm14 = vmor %vm181_vm13, %vm182_vm9 }
  0xaa   :  { %v178_v61 = vsub.f32 1.0, %v177_v53  ;;  %v204_v23 = vmul.f32 %v256_v20, %v201_v19 }
  0xab   :  { %v139_v0 = vadd.f32 %v270_v42, %v138_v57  ;;  %273 = vtanh.f32 %v197_v6 }
  0xac   :  { %v179_v1 = vmul.f32 %v272_v50, %v178_v61 }
  0xad   :  { %v143_v7 = vsel %vm142_vm10, %v270_v42, %v139_v0 }
  0xae   :  { %v180_v8 = vadd.f32 %v272_v50, %v179_v1  ;;  %v148_v10 = vsel %vm145_vm12, %v147_v4, %v143_v7 }
  0xaf   :  { %v196_v14 = vmul.f32 %v255_v47, %v148_v10 }
  0xb0   :  { %v184_v15 = vsel %vm183_vm14, %v272_v50, %v180_v8 }
  0xb1   :  { %v189_v17 = vsel %vm186_vm0, %v188_v12, %v184_v15  ;;  %v198_v18 = vadd.f32 %v196_v14, %v193_v13  ;;  %v274_v22 = vpop.eup %273 }
  0xb2   :  { %v202_v21 = vsub.f32 1.0, %v189_v17  ;;  %v206_v26 = vmul.f32 %v274_v22, %v204_v23 }
  0xb3   :  { %275 = vtanh.f32 %v198_v18 }
  0xb4   :  { %v205_v24 = vmul.f32 %v256_v20, %v202_v21 }
  0xb9   :  { %v276_v25 = vpop.eup %275 }
  0xba   :  { %v207_v27 = vmul.f32 %v276_v25, %v205_v24 }
  0xbc   :  { %v247_v28 = vpack.c.bf16 %v207_v27, %v206_v26 }
  0xbe   :  { %248 = vst [vmem:[%s375_s3] sm:$0xff] %v247_v28  }
  0xbf   :  { %216 = vsyncpa [#allocation3], 1 }

</bundles_post_ra>
